<compile_context>
chip_gen: v7x
topology: tpu7x:2x2x1
jax: 0.10.0
libtpu: 0.0.40
codegen_flags: <defaults>
</compile_context>

<pallas_src>
import jax
import jax.numpy as jnp
from jax.experimental import pallas as pl
from jax.experimental.pallas import tpu as pltpu

C_IN = 48
C_OUT = 4
BLOCK = 2  # depth_to_space block size

# 32768-column lane tiles: ~6 MiB/buffer f32 input (double-buffered 12 MiB)
# + ~1 MiB output; good on v6e/v7x, and safe on v5e with the raised VMEM limit.
DEFAULT_T_HW = 32768
VMEM_LIMIT_BYTES = 32 * 1024 * 1024


def _round_up(x, m):
    return (x + m - 1) // m * m


def _cdiv(a, b):
    return -(-a // b)


def _choose_tiles(n, hw, t_max):
    """Pick a lane tile (multiple of 128) with minimal padding and >=2 grid steps."""
    hw128 = _round_up(hw, 128)
    t_cap = max(128, min(_round_up(t_max, 128), hw128))
    num_tiles = _cdiv(hw128, t_cap)
    # v7x has 2 TensorCores: make sure the parallel grid has >= 2 steps.
    if n * num_tiles < 2 and hw128 >= 256:
        num_tiles = 2
    t_hw = _round_up(_cdiv(hw128, num_tiles), 128)  # balanced tiles, waste < 128 cols/tile
    return t_hw, num_tiles, t_hw * num_tiles


# ---------------------------------------------------------------------------
# Kernel 1: per-channel BN moments (sum, sum of squares) in one HBM pass.
# ---------------------------------------------------------------------------
def _bn_moments_kernel(x_ref, s1_ref, s2_ref):
    # x_ref:  (1, 48, T) channel-major activation tile (native dtype)
    # s1_ref: (1, 48, 1) per-batch per-channel running sum        (f32)
    # s2_ref: (1, 48, 1) per-batch per-channel running sum-of-sq  (f32)
    @pl.when(pl.program_id(1) == 0)
    def _():
        s1_ref[...] = jnp.zeros_like(s1_ref)
        s2_ref[...] = jnp.zeros_like(s2_ref)

    x = x_ref[0].astype(jnp.float32)                      # (48, T), upcast on-chip
    s1_ref[0] += jnp.sum(x, axis=1, keepdims=True)        # XLU cross-lane reduce
    s2_ref[0] += jnp.sum(x * x, axis=1, keepdims=True)


def bn_moments(x_cmaj, t_hw, num_tiles):
    n, cin, hw_padded = x_cmaj.shape
    return pl.pallas_call(
        _bn_moments_kernel,
        out_shape=(jax.ShapeDtypeStruct((n, cin, 1), jnp.float32),
                   jax.ShapeDtypeStruct((n, cin, 1), jnp.float32)),
        grid_spec=pltpu.PrefetchScalarGridSpec(
            num_scalar_prefetch=0,
            grid=(n, num_tiles),
            in_specs=[pl.BlockSpec((1, cin, t_hw), lambda b, j: (b, 0, j))],
            out_specs=[pl.BlockSpec((1, cin, 1), lambda b, j: (b, 0, 0)),
                       pl.BlockSpec((1, cin, 1), lambda b, j: (b, 0, 0))],
        ),
        compiler_params=pltpu.CompilerParams(
            dimension_semantics=("parallel", "arbitrary"),
            vmem_limit_bytes=VMEM_LIMIT_BYTES,
        ),
    )(x_cmaj)


# ---------------------------------------------------------------------------
# Kernel 2: fused BN-affine + ReLU + 1x1 conv, lane-dense in/out tiles.
# ---------------------------------------------------------------------------
def _fused_bn_relu_conv1x1_kernel(x_ref, scale_ref, bias_ref, w_ref, cb_ref, o_ref):
    # x_ref:     (1, 48, T)  channel-major activation tile (native dtype)
    # scale_ref: (48, 1)     folded BN scale  (gamma / sqrt(var+eps))
    # bias_ref:  (48, 1)     folded BN bias   (beta - gamma*mean/sqrt(var+eps))
    # w_ref:     (4, 48)     spectrally-normalized 1x1 conv weight (matmul LHS)
    # cb_ref:    (4, 1)      conv bias
    # o_ref:     (1, 4, T)   lane-dense output tile
    x = x_ref[0].astype(jnp.float32)                                  # (48, T)
    y = jnp.maximum(x * scale_ref[...] + bias_ref[...], 0.0)          # BN affine + ReLU
    out = jnp.dot(w_ref[...], y, preferred_element_type=jnp.float32)  # (4, T) on MXU
    o_ref[0] = (out + cb_ref[...]).astype(o_ref.dtype)


def fused_bn_relu_conv1x1(x_cmaj, scale, bias, w_lhs, conv_bias, t_hw, num_tiles):
    n, cin, hw_padded = x_cmaj.shape
    cout = w_lhs.shape[0]
    return pl.pallas_call(
        _fused_bn_relu_conv1x1_kernel,
        out_shape=jax.ShapeDtypeStruct((n, cout, hw_padded), jnp.float32),
        grid_spec=pltpu.PrefetchScalarGridSpec(
            num_scalar_prefetch=0,
            grid=(n, num_tiles),
            in_specs=[
                pl.BlockSpec((1, cin, t_hw), lambda b, j: (b, 0, j)),
                # Constant index maps -> params stay resident in VMEM across steps.
                pl.BlockSpec((cin, 1), lambda b, j: (0, 0)),
                pl.BlockSpec((cin, 1), lambda b, j: (0, 0)),
                pl.BlockSpec((cout, cin), lambda b, j: (0, 0)),
                pl.BlockSpec((cout, 1), lambda b, j: (0, 0)),
            ],
            out_specs=pl.BlockSpec((1, cout, t_hw), lambda b, j: (b, 0, j)),
        ),
        compiler_params=pltpu.CompilerParams(
            dimension_semantics=("parallel", "parallel"),
            vmem_limit_bytes=VMEM_LIMIT_BYTES,
        ),
    )(x_cmaj, scale, bias, w_lhs, conv_bias)


# ---------------------------------------------------------------------------
# Scalar / layout prep in plain JAX.
# ---------------------------------------------------------------------------
def spectral_normalize(w_mat, u, n_iter=1, eps=1e-12):
    # w_mat: (out, in).  One power iteration (PyTorch SpectralNorm default).
    # TODO(synk): PyTorch updates the `u` buffer in-place during training; this
    # forward-only version matches numerically but does not persist the new u.
    def norm(v):
        return v / (jnp.linalg.norm(v) + eps)

    for _ in range(n_iter):
        v = norm(w_mat.T @ u)
        u = norm(w_mat @ v)
    sigma = u @ (w_mat @ v)
    return w_mat / sigma


def depth_to_space(x_nchw, r):
    # PyTorch pixel_shuffle convention:
    # out[n, c, h*r+i, w*r+j] = x[n, c*r*r + i*r + j, h, w]
    n, c, h, w = x_nchw.shape
    co = c // (r * r)
    x = x_nchw.reshape(n, co, r, r, h, w)
    x = x.transpose(0, 1, 4, 2, 5, 3)
    return x.reshape(n, co, h * r, w * r)


def output_stack_forward(x, params, eps=1e-5, t_hw_max=DEFAULT_T_HW):
    n, c, h, w = x.shape
    assert c == C_IN
    hw = h * w

    # channel-major, spatially-flattened view: pure reshape, no transpose,
    # and NO upcast -- the kernels read x in its native HBM dtype.
    x_cmaj = x.reshape(n, C_IN, hw)

    t_hw, num_tiles, hw_padded = _choose_tiles(n, hw, t_hw_max)
    if hw_padded != hw:
        # Zero padding keeps the moment sums exact; padded output columns are
        # garbage (relu of bias) and are sliced off below.
        x_cmaj = jnp.pad(x_cmaj, ((0, 0), (0, 0), (0, hw_padded - hw)))

    # ---- BatchNorm2d(48) training-mode stats: single-pass sum / sum-of-squares
    s1, s2 = bn_moments(x_cmaj, t_hw, num_tiles)          # (N,48,1) partials
    count = n * hw                                        # real (unpadded) count
    mean = jnp.sum(s1[:, :, 0], axis=0) / count           # (48,)
    ex2 = jnp.sum(s2[:, :, 0], axis=0) / count
    var = jnp.maximum(ex2 - mean * mean, 0.0)             # biased var (ddof=0), clamp f32 cancellation
    inv_std = 1.0 / jnp.sqrt(var + eps)
    gamma = params["bn_gamma"].astype(jnp.float32)
    beta = params["bn_beta"].astype(jnp.float32)
    scale = (gamma * inv_std).reshape(C_IN, 1)
    bias = (beta - gamma * mean * inv_std).reshape(C_IN, 1)

    # ---- SpectralNorm(Conv2d(48,4,1)) weight prep
    w_mat = params["conv_w"].reshape(C_OUT, C_IN).astype(jnp.float32)   # 1x1 kernel
    w_sn = spectral_normalize(w_mat, params["sn_u"].astype(jnp.float32))
    conv_bias = params["conv_b"].reshape(C_OUT, 1).astype(jnp.float32)

    # ---- fused Pallas kernel: BN-affine + ReLU + 1x1 conv
    y_flat = fused_bn_relu_conv1x1(x_cmaj, scale, bias, w_sn, conv_bias, t_hw, num_tiles)
    if hw_padded != hw:
        y_flat = y_flat[:, :, :hw]

    # ---- back to NCHW image and depth_to_space
    # TODO(synk): the r=2 pixel-shuffle interleave could be fused into the
    # kernel output stage (XLU lane shuffle, t_hw multiple of W) to save one
    # HBM round-trip of the small 4-channel output; kept in JAX for robustness.
    y = y_flat.reshape(n, C_OUT, h, w)                    # (N,4,H,W)
    return depth_to_space(y, BLOCK)                       # (N,1,2H,2W)


def reference_forward(x, params, eps=1e-5):
    mean = jnp.mean(x, axis=(0, 2, 3), keepdims=True)
    var = jnp.var(x, axis=(0, 2, 3), keepdims=True)
    xn = (x - mean) / jnp.sqrt(var + eps)
    xn = xn * params["bn_gamma"][None, :, None, None] + params["bn_beta"][None, :, None, None]
    xn = jnp.maximum(xn, 0.0)
    w_sn = spectral_normalize(params["conv_w"].reshape(C_OUT, C_IN), params["sn_u"])
    y = jnp.einsum("nchw,oc->nohw", xn, w_sn) + params["conv_b"][None, :, None, None]
    return depth_to_space(y, BLOCK)


def make_params(key):
    ks = jax.random.split(key, 5)
    return {
        "bn_gamma": jax.random.normal(ks[0], (C_IN,), jnp.float32) * 0.1 + 1.0,
        "bn_beta": jax.random.normal(ks[1], (C_IN,), jnp.float32) * 0.1,
        "conv_w": jax.random.normal(ks[2], (C_OUT, C_IN, 1, 1), jnp.float32) * 0.1,
        "conv_b": jax.random.normal(ks[3], (C_OUT,), jnp.float32) * 0.1,
        "sn_u": jax.random.normal(ks[4], (C_OUT,), jnp.float32),
    }


if __name__ == "__main__":
    key = jax.random.PRNGKey(0)
    kx, kp = jax.random.split(key)

    N, H, W = 2, 16, 16
    x = jax.random.normal(kx, (N, C_IN, H, W), jnp.float32)
    params = make_params(kp)

    out = output_stack_forward(x, params)
    out = jax.block_until_ready(out)
    assert out.shape == (N, 1, H * BLOCK, W * BLOCK), out.shape

    ref = jax.block_until_ready(reference_forward(x, params))
    assert jnp.allclose(out, ref, atol=1e-4, rtol=1e-4), float(jnp.max(jnp.abs(out - ref)))

    print("KERNEL_OK")
</pallas_src>

<mosaic_0001>
module attributes {stable_mosaic.version = 11 : i64} {
  func.func @_bn_moments_kernel(%arg0: i32, %arg1: i32, %arg2: memref<1x48x256xf32, #tpu.memory_space<vmem>>, %arg3: memref<1x48x1xf32, #tpu.memory_space<vmem>>, %arg4: memref<1x48x1xf32, #tpu.memory_space<vmem>>) attributes {dimension_semantics = [#tpu.dimension_semantics<parallel>, #tpu.dimension_semantics<arbitrary>], iteration_bounds = array<i64: 2, 1>, scalar_prefetch = 0 : i64, scratch_operands = 0 : i64, tpu.core_type = #tpu.core_type<tc>, window_params = [{transform_indices = @transform_0, window_bounds = array<i64: 1, 48, 256>}, {transform_indices = @transform_1, window_bounds = array<i64: 1, 48, 1>}, {transform_indices = @transform_2, window_bounds = array<i64: 1, 48, 1>}]} {
    %c0_i32 = arith.constant 0 : i32
    %0 = arith.cmpi eq, %arg1, %c0_i32 : i32
    %1 = arith.extui %0 : i1 to i32
    %c0_i32_0 = arith.constant 0 : i32
    %2 = arith.cmpi ne, %1, %c0_i32_0 : i32
    scf.if %2 {
      %cst_16 = arith.constant 0.000000e+00 : f32
      %22 = vector.broadcast %cst_16 : f32 to vector<1x48x1xf32>
      %c0_17 = arith.constant 0 : index
      %c0_18 = arith.constant 0 : index
      %c0_19 = arith.constant 0 : index
      %23 = vector.load %arg3[%c0_17, %c0_18, %c0_19] : memref<1x48x1xf32, #tpu.memory_space<vmem>>, vector<1x48x1xf32>
      tpu.vector_store %arg3[%c0_17, %c0_18, %c0_19], %22 {strides = array<i32>} : memref<1x48x1xf32, #tpu.memory_space<vmem>>, vector<1x48x1xf32>,
      %cst_20 = arith.constant 0.000000e+00 : f32
      %24 = vector.broadcast %cst_20 : f32 to vector<1x48x1xf32>
      %c0_21 = arith.constant 0 : index
      %c0_22 = arith.constant 0 : index
      %c0_23 = arith.constant 0 : index
      %25 = vector.load %arg4[%c0_21, %c0_22, %c0_23] : memref<1x48x1xf32, #tpu.memory_space<vmem>>, vector<1x48x1xf32>
      tpu.vector_store %arg4[%c0_21, %c0_22, %c0_23], %24 {strides = array<i32>} : memref<1x48x1xf32, #tpu.memory_space<vmem>>, vector<1x48x1xf32>,
    } else {
    }
    %c0 = arith.constant 0 : index
    %c0_1 = arith.constant 0 : index
    %c0_2 = arith.constant 0 : index
    %3 = vector.load %arg2[%c0, %c0_1, %c0_2] : memref<1x48x256xf32, #tpu.memory_space<vmem>>, vector<1x48x256xf32>
    %4 = vector.shape_cast %3 : vector<1x48x256xf32> to vector<48x256xf32>
    %c0_3 = arith.constant 0 : index
    %c0_4 = arith.constant 0 : index
    %c0_5 = arith.constant 0 : index
    %5 = vector.load %arg3[%c0_3, %c0_4, %c0_5] : memref<1x48x1xf32, #tpu.memory_space<vmem>>, vector<1x48x1xf32>
    %6 = vector.shape_cast %5 : vector<1x48x1xf32> to vector<48x1xf32>
    %cst = arith.constant dense<0.000000e+00> : vector<48xf32>
    %7 = vector.multi_reduction <add>, %4, %cst [1] : vector<48x256xf32> to vector<48xf32>
    %8 = vector.shape_cast %7 : vector<48xf32> to vector<48x1xf32>
    %9 = arith.addf %6, %8 : vector<48x1xf32>
    %c0_6 = arith.constant 0 : index
    %c0_7 = arith.constant 0 : index
    %c0_8 = arith.constant 0 : index
    %10 = vector.load %arg3[%c0_6, %c0_7, %c0_8] : memref<1x48x1xf32, #tpu.memory_space<vmem>>, vector<1x48x1xf32>
    %11 = vector.shape_cast %10 : vector<1x48x1xf32> to vector<48x1xf32>
    %12 = vector.shape_cast %9 : vector<48x1xf32> to vector<1x48x1xf32>
    tpu.vector_store %arg3[%c0_6, %c0_7, %c0_8], %12 {strides = array<i32>} : memref<1x48x1xf32, #tpu.memory_space<vmem>>, vector<1x48x1xf32>,
    %c0_9 = arith.constant 0 : index
    %c0_10 = arith.constant 0 : index
    %c0_11 = arith.constant 0 : index
    %13 = vector.load %arg4[%c0_9, %c0_10, %c0_11] : memref<1x48x1xf32, #tpu.memory_space<vmem>>, vector<1x48x1xf32>
    %14 = vector.shape_cast %13 : vector<1x48x1xf32> to vector<48x1xf32>
    %15 = arith.mulf %4, %4 : vector<48x256xf32>
    %cst_12 = arith.constant dense<0.000000e+00> : vector<48xf32>
    %16 = vector.multi_reduction <add>, %15, %cst_12 [1] : vector<48x256xf32> to vector<48xf32>
    %17 = vector.shape_cast %16 : vector<48xf32> to vector<48x1xf32>
    %18 = arith.addf %14, %17 : vector<48x1xf32>
    %c0_13 = arith.constant 0 : index
    %c0_14 = arith.constant 0 : index
    %c0_15 = arith.constant 0 : index
    %19 = vector.load %arg4[%c0_13, %c0_14, %c0_15] : memref<1x48x1xf32, #tpu.memory_space<vmem>>, vector<1x48x1xf32>
    %20 = vector.shape_cast %19 : vector<1x48x1xf32> to vector<48x1xf32>
    %21 = vector.shape_cast %18 : vector<48x1xf32> to vector<1x48x1xf32>
    tpu.vector_store %arg4[%c0_13, %c0_14, %c0_15], %21 {strides = array<i32>} : memref<1x48x1xf32, #tpu.memory_space<vmem>>, vector<1x48x1xf32>,
    return
  }
  func.func @transform_0(%arg0: i32, %arg1: i32) -> (i32, i32, i32) {
    %c0_i32 = arith.constant 0 : i32
    %c0_i32_0 = arith.constant 0 : i32
    return %arg0, %c0_i32, %arg1 : i32, i32, i32
  }
  func.func @transform_1(%arg0: i32, %arg1: i32) -> (i32, i32, i32) {
    %c0_i32 = arith.constant 0 : i32
    %c0_i32_0 = arith.constant 0 : i32
    %c0_i32_1 = arith.constant 0 : i32
    return %arg0, %c0_i32, %c0_i32_0 : i32, i32, i32
  }
  func.func @transform_2(%arg0: i32, %arg1: i32) -> (i32, i32, i32) {
    %c0_i32 = arith.constant 0 : i32
    %c0_i32_0 = arith.constant 0 : i32
    %c0_i32_1 = arith.constant 0 : i32
    return %arg0, %c0_i32, %c0_i32_0 : i32, i32, i32
  }
}

</mosaic_0001>

<bundles_post_ra>
// kernel: tpu_custom_call.1
= control target key start
LH: loop header
LB: loop body
LE: loop exit
PB: predicated region body
PF: predicated region fallthrough
CT: control target
= control target key end

     0   :  { %8 = vsyncpa [#allocation3], 0  ;;  %s798_s0 = inlined_call_operand.hbm [shape: f32[2,48,256], index: 0, kind: input, shape index: {}]   ;;  %s799_s1 = inlined_call_operand.vmem [shape: f32[2,48,1], index: 1, kind: output, shape index: {0}]   ;;  %s800_s2 = inlined_call_operand.vmem [shape: f32[2,48,1], index: 2, kind: output, shape index: {1}]  }
   0x1   :  { %10 = vsyncpa [#allocation3 + $0x1], 0  ;;  %s592_s9 = smov 0   ;;  %s594_s10 = smov 0  }
   0x2   :  { %s596_s11 = smov 0   ;;  %s598_s12 = smov 0  }
   0x3   :  { %s600_s13 = smov 0   ;;  %s602_s14 = smov 0  }
   0x4 LB: > { %s419_s15 = sadd.s32 4294967295, %s571_s14   ;;  %s28_s16 = sadd.s32 1, %s567_s13  ;;  %s571_s14 = sphi %s602_s14, %s16_s14   ;;  %s567_s13 = sphi %s600_s13, %s807_s13   ;;  %s563_s12 = sphi %s598_s12, %s806_s12   ;;  %s559_s11 = sphi %s596_s11, %s805_s11   ;;  %s555_s10 = sphi %s594_s10, %s804_s10   ;;  %s551_s9 = sphi %s592_s9, %s803_s9  }
   0x5   : > { %p30_p0 = scmp.ge.s32.totalorder %s28_s16, 2  ;;  %s37_s17 = sadd.s32 1, %s559_s11 }
   0x6   : > { %p44_p1 = scmp.ne.s32.totalorder %s559_s11, %s555_s10  ;;  %p45_p2 = scmp.eq.s32.totalorder %s571_s14, 0 }
   0x7   : > { %s809_s16 = smov (%p30_p0, %s28_s16), 0  ;;  %p50_p4 = scmp.ne.s32.totalorder %s555_s10, %s551_s9 }
   0x8   : > { %p46_p3 = por %p45_p2, %p44_p1  ;;  %s32_s18 = ssub.s32 %s567_s13, %s809_s16 }
   0x9   : > { %p51_p5 = scmp.eq.s32.totalorder %s419_s15, 0  ;;  %p35_p6 = scmp.eq.s32.totalorder %s32_s18, 0 }
   0xa   : > { %p439_p8 = scmp.lt.s32.totalorder %s571_s14, 2  ;;  %s126_s21 = sand.u32 1, %s559_s11  }
   0xb   : > { %p631_p7 = por %p51_p5, %p50_p4  ;;  %s430_s22 = smul.u32 1536, %s567_s13 }
   0xc   : > { %s637_s20 = scalar_select %p35_p6, %s559_s11, %s37_s17  }
   0xd   : > { %s429_s23 = smul.u32 96, %s126_s21  ;;  %s644_s26 = scalar_lea.hbm %s798_s0, %s430_s22 }
   0xe   : > { %p646_p9 = pnand %p439_p8, %p46_p3  ;;  %s652_s30 = scalar_lea.sflag [#allocation3], %s126_s21 }
   0xf   : > { %s130_s28 = scalar_lea.vmem [#allocation2], %s429_s23  ;;  %s491_s3 = scalar_lea.hbm %s644_s26, 1536 }
  0x10   : > { %s139_s29 = sshll.u32 %s130_s28, 4  ;;  %p492_p10 = scmp.ne.s32.totalorder %s644_s26, %s491_s3  ;;  %s650_s29 = int_to_ptr.vmem [resolvable:$true] %s139_s29 }
  0x11   : > { %p493_p11 = pneg %p646_p9  ;;  %s496_s6 = scalar_lea.hbm %s798_s0, 3072 }
  0x12   : > { %p497_p0 = scmp.lt.u32.totalorder %s644_s26, %s798_s0  ;;  %p498_p1 = scmp.lt.u32.totalorder %s496_s6, %s491_s3 }
  0x13   : > { %p494_p12 = pnand %p493_p11, %p492_p10  ;;  %p500_p3 = scmp.lt.u32.totalorder %s491_s3, %s644_s26 }
  0x14   : > { %p499_p2 = por %p498_p1, %p497_p0 }
  0x15   : > { %p495_p13 = pneg %p494_p12 }
  0x16   : > { %p501_p4 = por %p500_p3, %p499_p2 }
  0x18   : > { %p502_p5 = pnand %p501_p4, %p495_p13 }
  0x1a   : > { %505 = shalt.err (!%p502_p5)
}
  0x1b   : > { %s506_s9 = scalar_lea.vmem %s650_s29, 1536  ;;  %s573_s15 = smov [#allocation2]  }
  0x1c   : > { %p507_p6 = scmp.ne.s32.totalorder %s650_s29, %s506_s9  ;;  %s511_s17 = sshll.u32 %s573_s15, 4  ;;  %s512_s17 = int_to_ptr.vmem [resolvable:$false] %s511_s17 }
  0x1d   : > { %s513_s18 = scalar_lea.vmem %s512_s17, 3072  ;;  %p514_p12 = scmp.lt.s32.totalorder %s650_s29, %s512_s17 }
  0x1e   : > { %p509_p8 = pnand %p507_p6, %p493_p11  ;;  %p515_p0 = scmp.lt.s32.totalorder %s513_s18, %s506_s9 }
  0x20   : > { %p510_p10 = pneg %p509_p8  ;;  %p516_p1 = por %p515_p0, %p514_p12 }
  0x22   : > { %p517_p2 = pnand %p516_p1, %p510_p10 }
  0x24   : > { %520 = shalt.err (!%p517_p2)
}
  0x25   : > { %s574_s21 = smov 256   ;;  %s575_s22 = smov 16  }
  0x26   : > { %438 = dma.hbm_to_vmem [thread:$0]  (!%p646_p9), %s644_s26, 1536, %s650_s29, %s652_s30, %s574_s21, %s574_s21, %s575_s22  }
  0x27   : > { %p424_p11 = scmp.ge.s32.totalorder %s571_s14, 1  ;;  %p147_p13 = scmp.lt.s32.totalorder %s571_s14, 3 }
  0x29   : > { %p148_p3 = pnand %p424_p11, %p147_p13 }
  0x2a   : > { %s153_s23 = sand.u32 (!%p148_p3), 1, %s555_s10  }
  0x2b   : > { %151 = sbr.rel (%p148_p3) target bundleno = 220 (0xdc), region = 24  ;;  %s154_s25 = scalar_lea.sflag (!%p148_p3), [#allocation3], %s153_s23 }
  0x2c   : > { %s431_s24 = smul.u32 (!%p148_p3), 96, %s153_s23 }
  0x2e   : > { %s683_s28 = scalar_lea.vmem (!%p148_p3), [#allocation2], %s431_s24 }
  0x32   : > { %546 = dma.done.wait (%p631_p7), %s154_s25, 1536  }
  0x33   : > { %548 = vsyncadd (%p631_p7), %s154_s25, 4294965760  ;;  %p184_p9 = scmp.lt.s32.totalorder %s563_s12, 1  ;;  %vm198_vm0 = vcmask 7168   ;;  %v215_v0 = vld [vmem:[%s683_s28 + $0x20] sm:$0xff]  ;;  %v216_v1 = vld [vmem:[%s683_s28 + $0x28] sm:$0xff]  ;;  %v576_v3 = vmov 0.0  }
  0x34   : > { %v211_v2 = vld [vmem:[%s683_s28] sm:$0xff]  ;;  %v235_v4 = vadd.f32 %v216_v1, %v215_v0  ;;  %v212_v5 = vld [vmem:[%s683_s28 + $0x8] sm:$0xff]  ;;  %v217_v6 = vld [vmem:[%s683_s28 + $0x30] sm:$0xff]  ;;  %v270_v26 = vmul.f32 %v215_v0, %v215_v0  ;;  %v271_v27 = vmul.f32 %v216_v1, %v216_v1 }
  0x35   : > { %s811_s12 = smov (!%p184_p9, %s563_s12), 1  ;;  %v218_v7 = vld [vmem:[%s683_s28 + $0x38] sm:$0xff]  ;;  %v229_v8 = vadd.f32 %v212_v5, %v211_v2  ;;  %v213_v9 = vld [vmem:[%s683_s28 + $0x10] sm:$0xff]  ;;  %v219_v15 = vld [vmem:[%s683_s28 + $0x40] sm:$0xff]  ;;  %v266_v20 = vmul.f32 %v211_v2, %v211_v2  ;;  %v267_v21 = vmul.f32 %v212_v5, %v212_v5  ;;  %v272_v24 = vmul.f32 %v217_v6, %v217_v6 }
  0x36   : > { %s432_s26 = smul.u32 48, %s811_s12  ;;  %v214_v10 = vld [vmem:[%s683_s28 + $0x18] sm:$0xff]  ;;  %236 = vadd.xlane.f32.xlu1 %v235_v4  ;;  %v238_v11 = vadd.f32 %v218_v7, %v217_v6  ;;  %v221_v13 = vld [vmem:[%s683_s28 + $0x50] sm:$0xff]  ;;  %v220_v16 = vld [vmem:[%s683_s28 + $0x48] sm:$0xff]  ;;  %v268_v18 = vmul.f32 %v213_v9, %v213_v9  ;;  %v273_v25 = vmul.f32 %v218_v7, %v218_v7  ;;  %v284_v32 = vadd.f32 %v271_v27, %v270_v26 }
  0x37   : > { %230 = vadd.xlane.f32.xlu0 %v229_v8  ;;  %v232_v12 = vadd.f32 %v214_v10, %v213_v9  ;;  %v222_v14 = vld [vmem:[%s683_s28 + $0x58] sm:$0xff]  ;;  %v269_v19 = vmul.f32 %v214_v10, %v214_v10  ;;  %v241_v22 = vadd.f32 %v220_v16, %v219_v15  ;;  %v278_v28 = vadd.f32 %v267_v21, %v266_v20 }
  0x38   : > { %s699_s19 = scalar_lea.vmem %s799_s1, %s432_s26  ;;  %v244_v17 = vadd.f32 %v222_v14, %v221_v13  ;;  %v287_v29 = vadd.f32 %v273_v25, %v272_v24  ;;  %v276_v30 = vmul.f32 %v221_v13, %v221_v13  ;;  %v277_v31 = vmul.f32 %v222_v14, %v222_v14  ;;  %s730_s4 = scalar_lea.vmem %s800_s2, %s432_s26 }
  0x39   : > { %201 = vst.msk [vmem:[%s699_s19 + $0x10] sm:$0xff] %vm198_vm0, %v576_v3  ;;  %199 = vst.msk [vmem:[%s699_s19] sm:$0xff] %vm198_vm0, %v576_v3  ;;  %v281_v23 = vadd.f32 %v269_v19, %v268_v18  ;;  %v274_v33 = vmul.f32 %v219_v15, %v219_v15  ;;  %v275_v34 = vmul.f32 %v220_v16, %v220_v16 }
  0x3a   : > { %200 = vst.msk [vmem:[%s699_s19 + $0x8] sm:$0xff] %vm198_vm0, %v576_v3  ;;  %202 = vst.msk [vmem:[%s699_s19 + $0x18] sm:$0xff] %vm198_vm0, %v576_v3  ;;  %239 = vadd.xlane.f32.xlu1 %v238_v11  ;;  %v293_v35 = vadd.f32 %v277_v31, %v276_v30 }
  0x3b   : > { %203 = vst.msk [vmem:[%s699_s19 + $0x20] sm:$0xff] %vm198_vm0, %v576_v3  ;;  %204 = vst.msk [vmem:[%s699_s19 + $0x28] sm:$0xff] %vm198_vm0, %v576_v3  ;;  %233 = vadd.xlane.f32.xlu0 %v232_v12  ;;  %v290_v36 = vadd.f32 %v275_v34, %v274_v33 }
  0x3c   : > { %206 = vst.msk [vmem:[%s730_s4 + $0x8] sm:$0xff] %vm198_vm0, %v576_v3  ;;  %205 = vst.msk [vmem:[%s730_s4] sm:$0xff] %vm198_vm0, %v576_v3 }
  0x3d   : > { %207 = vst.msk [vmem:[%s730_s4 + $0x10] sm:$0xff] %vm198_vm0, %v576_v3  ;;  %208 = vst.msk [vmem:[%s730_s4 + $0x18] sm:$0xff] %vm198_vm0, %v576_v3 }
  0x3e   : > { %245 = vadd.xlane.f32.xlu1 %v244_v17  ;;  %209 = vst.msk [vmem:[%s730_s4 + $0x20] sm:$0xff] %vm198_vm0, %v576_v3  ;;  %210 = vst.msk [vmem:[%s730_s4 + $0x28] sm:$0xff] %vm198_vm0, %v576_v3 }
  0x3f   : > { %242 = vadd.xlane.f32.xlu0 %v241_v22 }
  0x40   : > { %v225_v37 = vld [vmem:[%s699_s19 + $0x10] sm:$0xff]  ;;  %v223_v38 = vld [vmem:[%s699_s19] sm:$0xff] }
  0x41   : > { %v226_v43 = vld [vmem:[%s699_s19 + $0x18] sm:$0xff]  ;;  %v224_v44 = vld [vmem:[%s699_s19 + $0x8] sm:$0xff] }
  0x42   : > { %282 = vadd.xlane.f32.xlu1 %v281_v23  ;;  %v228_v49 = vld [vmem:[%s699_s19 + $0x28] sm:$0xff]  ;;  %v227_v50 = vld [vmem:[%s699_s19 + $0x20] sm:$0xff] }
  0x43   : > { %279 = vadd.xlane.f32.xlu0 %v278_v28  ;;  %v261_v55 = vld [vmem:[%s730_s4 + $0x8] sm:$0xff]  ;;  %v260_v56 = vld [vmem:[%s730_s4] sm:$0xff] }
  0x44   : > { %v263_v61 = vld [vmem:[%s730_s4 + $0x18] sm:$0xff]  ;;  %v262_v62 = vld [vmem:[%s730_s4 + $0x10] sm:$0xff] }
  0x45   : > { %v265_v3 = vld [vmem:[%s730_s4 + $0x28] sm:$0xff]  ;;  %v264_v4 = vld [vmem:[%s730_s4 + $0x20] sm:$0xff] }
  0x46   : > { %288 = vadd.xlane.f32.xlu1 %v287_v29 }
  0x47   : > { %285 = vadd.xlane.f32.xlu0 %v284_v32 }
  0x4a   : > { %294 = vadd.xlane.f32.xlu1 %v293_v35 }
  0x4b   : > { %291 = vadd.xlane.f32.xlu0 %v290_v36 }
  0xc3   : > { %v237_v39 = vpop.xlane.xlu1 %236 }
  0xc4   : > { %v249_v40 = vadd.f32 %v237_v39, %v225_v37  ;;  %v231_v41 = vpop.xlane.xlu0 %230 }
  0xc5   : > { %v247_v42 = vadd.f32 %v231_v41, %v223_v38 }
  0xc6   : > { %256 = vst.msk [vmem:[%s699_s19 + $0x10] sm:$0xff] %vm198_vm0, %v249_v40 }
  0xc7   : > { %254 = vst.msk [vmem:[%s699_s19] sm:$0xff] %vm198_vm0, %v247_v42  ;;  %v240_v45 = vpop.xlane.xlu1 %239 }
  0xc8   : > { %v250_v46 = vadd.f32 %v240_v45, %v226_v43  ;;  %v234_v47 = vpop.xlane.xlu0 %233 }
  0xc9   : > { %v248_v48 = vadd.f32 %v234_v47, %v224_v44 }
  0xca   : > { %257 = vst.msk [vmem:[%s699_s19 + $0x18] sm:$0xff] %vm198_vm0, %v250_v46 }
  0xcb   : > { %255 = vst.msk [vmem:[%s699_s19 + $0x8] sm:$0xff] %vm198_vm0, %v248_v48  ;;  %v246_v51 = vpop.xlane.xlu1 %245 }
  0xcc   : > { %v252_v52 = vadd.f32 %v246_v51, %v228_v49  ;;  %v243_v53 = vpop.xlane.xlu0 %242 }
  0xcd   : > { %v251_v54 = vadd.f32 %v243_v53, %v227_v50 }
  0xce   : > { %259 = vst.msk [vmem:[%s699_s19 + $0x28] sm:$0xff] %vm198_vm0, %v252_v52 }
  0xcf   : > { %258 = vst.msk [vmem:[%s699_s19 + $0x20] sm:$0xff] %vm198_vm0, %v251_v54  ;;  %v283_v57 = vpop.xlane.xlu1 %282 }
  0xd0   : > { %v297_v58 = vadd.f32 %v283_v57, %v261_v55  ;;  %v280_v59 = vpop.xlane.xlu0 %279 }
  0xd1   : > { %v296_v60 = vadd.f32 %v280_v59, %v260_v56 }
  0xd2   : > { %303 = vst.msk [vmem:[%s730_s4 + $0x8] sm:$0xff] %vm198_vm0, %v297_v58 }
  0xd3   : > { %302 = vst.msk [vmem:[%s730_s4] sm:$0xff] %vm198_vm0, %v296_v60  ;;  %v289_v63 = vpop.xlane.xlu1 %288 }
  0xd4   : > { %v299_v0 = vadd.f32 %v289_v63, %v263_v61  ;;  %v286_v1 = vpop.xlane.xlu0 %285 }
  0xd5   : > { %v298_v2 = vadd.f32 %v286_v1, %v262_v62 }
  0xd6   : > { %305 = vst.msk [vmem:[%s730_s4 + $0x18] sm:$0xff] %vm198_vm0, %v299_v0 }
  0xd7   : > { %304 = vst.msk [vmem:[%s730_s4 + $0x10] sm:$0xff] %vm198_vm0, %v298_v2  ;;  %v295_v5 = vpop.xlane.xlu1 %294 }
  0xd8   : > { %v301_v6 = vadd.f32 %v295_v5, %v265_v3  ;;  %v292_v7 = vpop.xlane.xlu0 %291 }
  0xd9   : > { %v300_v8 = vadd.f32 %v292_v7, %v264_v4 }
  0xda   : > { %307 = vst.msk [vmem:[%s730_s4 + $0x28] sm:$0xff] %vm198_vm0, %v301_v6 }
  0xdb   : > { %306 = vst.msk [vmem:[%s730_s4 + $0x20] sm:$0xff] %vm198_vm0, %v300_v8 }
  0xdc PF: > { %s16_s14 = sadd.s32 1, %s571_s14   ;;  %s803_s9 = smov %s555_s10 }
  0xdd   : > { %p13_p7 = scmp.ge.s32.totalorder %s16_s14, 4   ;;  %s804_s10 = smov %s559_s11 }
  0xde   : > { %s805_s11 = smov %s637_s20  ;;  %s806_s12 = smov %s567_s13 }
  0xdf   : > { %s807_s13 = smov %s809_s16  ;;  %15 = sbr.rel (!%p13_p7) target bundleno = 4 (0x4), region = 80 }
  0xe6   :  { %345 = vsyncpa [#allocation3], 1 }
  0xe7   :  { %347 = vsyncpa [#allocation3 + $0x1], 1 }

</bundles_post_ra>
